<compile_context>
chip_gen: v5e
topology: v5e:2x2
jax: 0.10.0
libtpu: 0.0.40
codegen_flags: <defaults>
</compile_context>

<pallas_src>
import functools

import jax
import jax.numpy as jnp
from jax.experimental import pallas as pl
from jax.experimental.pallas import tpu as pltpu

_H1 = 25  # hidden width of l1 / rev_l1 (fixed by the module definition)
_H2 = 2   # embedding width (fixed by the module definition)


def _round_up(x, m):
    return ((x + m - 1) // m) * m


@functools.lru_cache(maxsize=None)
def _tpu_vmem_capacity():
    """Physical VMEM bytes per TensorCore (fallback: 128 MiB)."""
    try:
        info = pltpu.get_tpu_info()
        v = getattr(info, "vmem_capacity_bytes", None)
        if v:
            return int(v)
    except Exception:
        pass
    return 128 * 1024 * 1024


@functools.lru_cache(maxsize=None)
def _num_tensorcores():
    """TensorCores a single Pallas kernel can shard 'parallel' axes across."""
    try:
        info = pltpu.get_tpu_info()
        for name in ("num_cores", "core_count", "num_tensorcores"):
            v = getattr(info, name, None)
            if v:
                return max(1, int(v))
    except Exception:
        pass
    try:
        kind = jax.devices()[0].device_kind.lower()
        # v7x (and megacore v4/v5p) expose 2 TensorCores to one kernel.
        if ("v7" in kind) or ("v4" in kind) or ("v5p" in kind):
            return 2
    except Exception:
        pass
    return 1  # v5e / v6e: one TensorCore per chip.


def _vmem_estimate(bb, size):
    """Layout-aware VMEM bytes: (8,128)-padded tiles, double-buffered I/O,
    in-kernel f32 intermediates, and resident (double-buffered) params."""
    bb_p = _round_up(max(bb, 8), 8)
    sz_p = _round_up(size, 128)
    h1_p = _round_up(_H1, 128)   # 128
    h2_p = _round_up(_H2, 128)   # 128
    # Pipelined (double-buffered) x / o / embed tiles.
    tiles = 2 * bb_p * (sz_p + sz_p + h2_p) * 4
    # In-kernel f32 intermediates: h1, h2 ([bb,25]) and e0/e1 ([bb,1] each).
    interm = bb_p * (2 * h1_p + 2 * h2_p) * 4
    # Resident parameters (counted double-buffered to be conservative).
    par = 2 * 4 * (
        _round_up(size, 8) * h1_p + 8 * h1_p +     # W1 [size,25], b1 [1,25]
        8 * h1_p + 8 * h2_p +                      # W2^T [2,25],  b2 [1,2]
        8 * h1_p + 8 * h1_p +                      # W3 [2,25],    b3 [1,25]
        _round_up(_H1, 8) * sz_p + 8 * sz_p        # W4 [25,size], b4 [1,size]
    )
    return tiles + interm + par


def _choose_block_b(batch, requested, size, budget, num_cores):
    bb = max(8, min(_round_up(requested, 8), _round_up(batch, 8)))
    # Shrink only when the padding-aware estimate exceeds the per-chip budget.
    while bb > 8 and _vmem_estimate(bb, size) > budget:
        bb = max(8, _round_up(bb // 2, 8))
    # Multi-TensorCore parts (v7x / megacore): make the number of "parallel"
    # grid steps a multiple of the core count and near-balanced so both cores
    # get equal work.  Single-TC parts (v5e/v6e) keep one big block — a forced
    # split there would only add a pure-overhead grid step.
    if num_cores >= 2 and batch >= 8 * num_cores:
        n_steps = max(num_cores, pl.cdiv(batch, bb))
        n_steps = _round_up(n_steps, num_cores)
        bb_bal = max(8, _round_up(pl.cdiv(batch, n_steps), 8))
        if (_vmem_estimate(bb_bal, size) <= budget
                and pl.cdiv(batch, bb_bal) <= n_steps):
            bb = bb_bal
    return bb


def ae_kernel(x_ref,
              w1_ref, b1_ref,
              w2t_ref, b2_ref,   # W2 passed TRANSPOSED: [2, 25]
              w3_ref, b3_ref,    # W3 in kernel layout:  [2, 25]
              w4_ref, b4_ref,
              embed_ref, out_ref):
    """Whole forward (2 MXU matmuls + VPU mid-layers + relus) in one kernel."""
    x = x_ref[...]

    # ---- layer 1: Linear(SIZE, 25) + relu  (MXU) ----
    h1 = jnp.dot(x, w1_ref[...], preferred_element_type=jnp.float32) + b1_ref[...]
    h1 = jnp.maximum(h1, 0.0)

    # ---- layer 2: Linear(25, 2) + relu ----
    # N=2 contraction: VPU multiply + cross-lane reduce (XLU) instead of a
    # <2%-utilized MXU push/pop.
    e0 = jnp.sum(h1 * w2t_ref[0:1, :], axis=-1, keepdims=True) + b2_ref[:, 0:1]
    e1 = jnp.sum(h1 * w2t_ref[1:2, :], axis=-1, keepdims=True) + b2_ref[:, 1:2]
    e0 = jnp.maximum(e0, 0.0)
    e1 = jnp.maximum(e1, 0.0)

    # Write the two embedding columns directly — no concat / lane relayout.
    embed_ref[:, 0:1] = e0.astype(embed_ref.dtype)
    embed_ref[:, 1:2] = e1.astype(embed_ref.dtype)

    # ---- layer 3: Linear(2, 25) + relu ----
    # K=2 contraction: two broadcast FMAs on the VPU.
    h2 = e0 * w3_ref[0:1, :] + e1 * w3_ref[1:2, :] + b3_ref[...]
    h2 = jnp.maximum(h2, 0.0)

    # ---- layer 4: Linear(25, SIZE)  (MXU) ----
    o = jnp.dot(h2, w4_ref[...], preferred_element_type=jnp.float32) + b4_ref[...]
    out_ref[...] = o.astype(out_ref.dtype)


@functools.partial(jax.jit, static_argnames=("block_b",))
def ae_forward(x, params, block_b=4096):
    """x: [B, SIZE] float32. params: dict of W1..W4, b1..b4. Returns (embed, o)."""
    B, size = x.shape

    cap = _tpu_vmem_capacity()
    num_cores = _num_tensorcores()
    # ~45% of physical VMEM for tiles+params (≈57 MiB on 128 MiB parts,
    # ≈28 MiB on v7x's 64 MiB), leaving room for compiler scratch.
    budget = int(0.45 * cap)
    bb = _choose_block_b(B, block_b, size, budget, num_cores)
    grid = (pl.cdiv(B, bb),)

    # Replicated (resident) parameter spec: full array, constant block index,
    # so Pallas does not re-DMA it every grid step.
    def rep(shape):
        return pl.BlockSpec(shape, lambda i: (0,) * len(shape))

    out_shapes = (
        jax.ShapeDtypeStruct((B, _H2), jnp.float32),    # embed
        jax.ShapeDtypeStruct((B, size), jnp.float32),   # o
    )

    est = _vmem_estimate(bb, size)
    # Never request the full physical VMEM: cap at 75% (≈48 MiB on v7x).
    vmem_limit = int(min(int(0.75 * cap), max(32 * 1024 * 1024, 2 * est)))

    embed, o = pl.pallas_call(
        ae_kernel,
        out_shape=out_shapes,
        grid_spec=pltpu.PrefetchScalarGridSpec(
            num_scalar_prefetch=0,
            grid=grid,
            in_specs=[
                pl.BlockSpec((bb, size), lambda i: (i, 0)),   # x tile
                rep((size, _H1)), rep((1, _H1)),              # W1, b1
                rep((_H2, _H1)), rep((1, _H2)),               # W2^T, b2
                rep((_H2, _H1)), rep((1, _H1)),               # W3, b3
                rep((_H1, size)), rep((1, size)),             # W4, b4
            ],
            out_specs=[
                pl.BlockSpec((bb, _H2), lambda i: (i, 0)),
                pl.BlockSpec((bb, size), lambda i: (i, 0)),
            ],
        ),
        compiler_params=pltpu.CompilerParams(
            dimension_semantics=("parallel",),
            vmem_limit_bytes=vmem_limit),
    )(x,
      params["W1"], params["b1"],
      params["W2"].T, params["b2"],     # pass W2 transposed -> [2, 25]
      params["W3"], params["b3"],
      params["W4"], params["b4"])
    return embed, o


def init_params(key, size):
    """nn.Linear-style init: U(-1/sqrt(fan_in), 1/sqrt(fan_in)).

    Weights stored as [in_features, out_features] (kernel layout)."""
    dims = [(size, _H1), (_H1, _H2), (_H2, _H1), (_H1, size)]
    params = {}
    keys = jax.random.split(key, 2 * len(dims))
    for n, (fan_in, fan_out) in enumerate(dims):
        bound = 1.0 / (fan_in ** 0.5)
        kw, kb = keys[2 * n], keys[2 * n + 1]
        params[f"W{n+1}"] = jax.random.uniform(
            kw, (fan_in, fan_out), jnp.float32, -bound, bound)
        params[f"b{n+1}"] = jax.random.uniform(
            kb, (1, fan_out), jnp.float32, -bound, bound)
    return params


def ae_reference(x, params):
    """Pure-JAX reference of the PyTorch forward for correctness checking."""
    h1 = jax.nn.relu(x @ params["W1"] + params["b1"])
    emb = jax.nn.relu(h1 @ params["W2"] + params["b2"])
    h2 = jax.nn.relu(emb @ params["W3"] + params["b3"])
    o = h2 @ params["W4"] + params["b4"]
    return emb, o


if __name__ == "__main__":
    SIZE = 32   # config['SIZE']

    key = jax.random.PRNGKey(0)
    k_params, k_x1, k_x2 = jax.random.split(key, 3)
    params = init_params(k_params, SIZE)

    # Batch of 64: single big block on 1-TC chips (v5e/v6e); two balanced
    # 32-row "parallel" blocks on 2-TC chips (v7x).
    x = jax.random.normal(k_x1, (64, SIZE), jnp.float32)
    embed, o = ae_forward(x, params)
    jax.block_until_ready((embed, o))
    emb_ref, o_ref = ae_reference(x, params)
    assert embed.shape == (64, _H2) and o.shape == (64, SIZE)
    assert jnp.allclose(embed, emb_ref, atol=1e-5, rtol=1e-5)
    assert jnp.allclose(o, o_ref, atol=1e-5, rtol=1e-5)

    # Non-divisible batch exercises the partial trailing block.
    x2 = jax.random.normal(k_x2, (50, SIZE), jnp.float32)
    embed2, o2 = ae_forward(x2, params)
    jax.block_until_ready((embed2, o2))
    emb2_ref, o2_ref = ae_reference(x2, params)
    assert jnp.allclose(embed2, emb2_ref, atol=1e-5, rtol=1e-5)
    assert jnp.allclose(o2, o2_ref, atol=1e-5, rtol=1e-5)

    print("KERNEL_OK")
</pallas_src>

<mosaic_0001>
module attributes {stable_mosaic.version = 11 : i64} {
  func.func @ae_kernel(%arg0: i32, %arg1: memref<64x32xf32, #tpu.memory_space<vmem>>, %arg2: memref<32x25xf32, #tpu.memory_space<vmem>>, %arg3: memref<1x25xf32, #tpu.memory_space<vmem>>, %arg4: memref<2x25xf32, #tpu.memory_space<vmem>>, %arg5: memref<1x2xf32, #tpu.memory_space<vmem>>, %arg6: memref<2x25xf32, #tpu.memory_space<vmem>>, %arg7: memref<1x25xf32, #tpu.memory_space<vmem>>, %arg8: memref<25x32xf32, #tpu.memory_space<vmem>>, %arg9: memref<1x32xf32, #tpu.memory_space<vmem>>, %arg10: memref<64x2xf32, #tpu.memory_space<vmem>>, %arg11: memref<64x32xf32, #tpu.memory_space<vmem>>) attributes {dimension_semantics = [#tpu.dimension_semantics<parallel>], iteration_bounds = array<i64: 1>, scalar_prefetch = 0 : i64, scratch_operands = 0 : i64, tpu.core_type = #tpu.core_type<tc>, window_params = [{transform_indices = @transform_0, window_bounds = array<i64: 64, 32>}, {pipeline_mode = #tpu.pipeline_mode<synchronous>, transform_indices = @transform_1, window_bounds = array<i64: 32, 25>}, {pipeline_mode = #tpu.pipeline_mode<synchronous>, transform_indices = @transform_2, window_bounds = array<i64: 1, 25>}, {pipeline_mode = #tpu.pipeline_mode<synchronous>, transform_indices = @transform_3, window_bounds = array<i64: 2, 25>}, {pipeline_mode = #tpu.pipeline_mode<synchronous>, transform_indices = @transform_4, window_bounds = array<i64: 1, 2>}, {pipeline_mode = #tpu.pipeline_mode<synchronous>, transform_indices = @transform_5, window_bounds = array<i64: 2, 25>}, {pipeline_mode = #tpu.pipeline_mode<synchronous>, transform_indices = @transform_6, window_bounds = array<i64: 1, 25>}, {pipeline_mode = #tpu.pipeline_mode<synchronous>, transform_indices = @transform_7, window_bounds = array<i64: 25, 32>}, {pipeline_mode = #tpu.pipeline_mode<synchronous>, transform_indices = @transform_8, window_bounds = array<i64: 1, 32>}, {transform_indices = @transform_9, window_bounds = array<i64: 64, 2>}, {transform_indices = @transform_10, window_bounds = array<i64: 64, 32>}]} {
    %c0 = arith.constant 0 : index
    %c0_0 = arith.constant 0 : index
    %0 = vector.load %arg1[%c0, %c0_0] : memref<64x32xf32, #tpu.memory_space<vmem>>, vector<64x32xf32>
    %c0_1 = arith.constant 0 : index
    %c0_2 = arith.constant 0 : index
    %1 = vector.load %arg2[%c0_1, %c0_2] : memref<32x25xf32, #tpu.memory_space<vmem>>, vector<32x25xf32>
    %cst = arith.constant dense<0.000000e+00> : vector<64x25xf32>
    %2 = tpu.matmul %0, %1, %cst {dimension_numbers = #tpu.dot_dimension_numbers<[1], [0], [0], [1], [0, 0, 1, 1], [], []>} : vector<64x32xf32>, vector<32x25xf32>, vector<64x25xf32> -> vector<64x25xf32>
    %c0_3 = arith.constant 0 : index
    %c0_4 = arith.constant 0 : index
    %3 = vector.load %arg3[%c0_3, %c0_4] : memref<1x25xf32, #tpu.memory_space<vmem>>, vector<1x25xf32>
    %4 = vector.broadcast %3 : vector<1x25xf32> to vector<64x25xf32>
    %5 = arith.addf %2, %4 : vector<64x25xf32>
    %cst_5 = arith.constant 0.000000e+00 : f32
    %6 = vector.broadcast %cst_5 : f32 to vector<64x25xf32>
    %7 = arith.maximumf %5, %6 : vector<64x25xf32>
    %c0_6 = arith.constant 0 : index
    %c0_7 = arith.constant 0 : index
    %8 = vector.load %arg4[%c0_6, %c0_7] : memref<2x25xf32, #tpu.memory_space<vmem>>, vector<1x25xf32>
    %9 = vector.broadcast %8 : vector<1x25xf32> to vector<64x25xf32>
    %10 = arith.mulf %7, %9 : vector<64x25xf32>
    %cst_8 = arith.constant dense<0.000000e+00> : vector<64xf32>
    %11 = vector.multi_reduction <add>, %10, %cst_8 [1] : vector<64x25xf32> to vector<64xf32>
    %12 = vector.shape_cast %11 : vector<64xf32> to vector<64x1xf32>
    %c0_9 = arith.constant 0 : index
    %c0_10 = arith.constant 0 : index
    %13 = vector.load %arg5[%c0_9, %c0_10] : memref<1x2xf32, #tpu.memory_space<vmem>>, vector<1x1xf32>
    %14 = vector.broadcast %13 : vector<1x1xf32> to vector<64x1xf32>
    %15 = arith.addf %12, %14 : vector<64x1xf32>
    %c1 = arith.constant 1 : index
    %c0_11 = arith.constant 0 : index
    %16 = vector.load %arg4[%c1, %c0_11] : memref<2x25xf32, #tpu.memory_space<vmem>>, vector<1x25xf32>
    %17 = vector.broadcast %16 : vector<1x25xf32> to vector<64x25xf32>
    %18 = arith.mulf %7, %17 : vector<64x25xf32>
    %cst_12 = arith.constant dense<0.000000e+00> : vector<64xf32>
    %19 = vector.multi_reduction <add>, %18, %cst_12 [1] : vector<64x25xf32> to vector<64xf32>
    %20 = vector.shape_cast %19 : vector<64xf32> to vector<64x1xf32>
    %c0_13 = arith.constant 0 : index
    %c1_14 = arith.constant 1 : index
    %21 = vector.load %arg5[%c0_13, %c1_14] : memref<1x2xf32, #tpu.memory_space<vmem>>, vector<1x1xf32>
    %22 = vector.broadcast %21 : vector<1x1xf32> to vector<64x1xf32>
    %23 = arith.addf %20, %22 : vector<64x1xf32>
    %cst_15 = arith.constant 0.000000e+00 : f32
    %24 = vector.broadcast %cst_15 : f32 to vector<64x1xf32>
    %25 = arith.maximumf %15, %24 : vector<64x1xf32>
    %cst_16 = arith.constant 0.000000e+00 : f32
    %26 = vector.broadcast %cst_16 : f32 to vector<64x1xf32>
    %27 = arith.maximumf %23, %26 : vector<64x1xf32>
    %c0_17 = arith.constant 0 : index
    %c0_18 = arith.constant 0 : index
    %28 = vector.load %arg10[%c0_17, %c0_18] : memref<64x2xf32, #tpu.memory_space<vmem>>, vector<64x1xf32>
    tpu.vector_store %arg10[%c0_17, %c0_18], %25 {strides = array<i32>} : memref<64x2xf32, #tpu.memory_space<vmem>>, vector<64x1xf32>,
    %c0_19 = arith.constant 0 : index
    %c1_20 = arith.constant 1 : index
    %29 = vector.load %arg10[%c0_19, %c1_20] : memref<64x2xf32, #tpu.memory_space<vmem>>, vector<64x1xf32>
    tpu.vector_store %arg10[%c0_19, %c1_20], %27 {strides = array<i32>} : memref<64x2xf32, #tpu.memory_space<vmem>>, vector<64x1xf32>,
    %c0_21 = arith.constant 0 : index
    %c0_22 = arith.constant 0 : index
    %30 = vector.load %arg6[%c0_21, %c0_22] : memref<2x25xf32, #tpu.memory_space<vmem>>, vector<1x25xf32>
    %31 = vector.broadcast %25 : vector<64x1xf32> to vector<64x25xf32>
    %32 = vector.broadcast %30 : vector<1x25xf32> to vector<64x25xf32>
    %33 = arith.mulf %31, %32 : vector<64x25xf32>
    %c1_23 = arith.constant 1 : index
    %c0_24 = arith.constant 0 : index
    %34 = vector.load %arg6[%c1_23, %c0_24] : memref<2x25xf32, #tpu.memory_space<vmem>>, vector<1x25xf32>
    %35 = vector.broadcast %27 : vector<64x1xf32> to vector<64x25xf32>
    %36 = vector.broadcast %34 : vector<1x25xf32> to vector<64x25xf32>
    %37 = arith.mulf %35, %36 : vector<64x25xf32>
    %38 = arith.addf %33, %37 : vector<64x25xf32>
    %c0_25 = arith.constant 0 : index
    %c0_26 = arith.constant 0 : index
    %39 = vector.load %arg7[%c0_25, %c0_26] : memref<1x25xf32, #tpu.memory_space<vmem>>, vector<1x25xf32>
    %40 = vector.broadcast %39 : vector<1x25xf32> to vector<64x25xf32>
    %41 = arith.addf %38, %40 : vector<64x25xf32>
    %cst_27 = arith.constant 0.000000e+00 : f32
    %42 = vector.broadcast %cst_27 : f32 to vector<64x25xf32>
    %43 = arith.maximumf %41, %42 : vector<64x25xf32>
    %c0_28 = arith.constant 0 : index
    %c0_29 = arith.constant 0 : index
    %44 = vector.load %arg8[%c0_28, %c0_29] : memref<25x32xf32, #tpu.memory_space<vmem>>, vector<25x32xf32>
    %cst_30 = arith.constant dense<0.000000e+00> : vector<64x32xf32>
    %45 = tpu.matmul %43, %44, %cst_30 {dimension_numbers = #tpu.dot_dimension_numbers<[1], [0], [0], [1], [0, 0, 1, 1], [], []>} : vector<64x25xf32>, vector<25x32xf32>, vector<64x32xf32> -> vector<64x32xf32>
    %c0_31 = arith.constant 0 : index
    %c0_32 = arith.constant 0 : index
    %46 = vector.load %arg9[%c0_31, %c0_32] : memref<1x32xf32, #tpu.memory_space<vmem>>, vector<1x32xf32>
    %47 = vector.broadcast %46 : vector<1x32xf32> to vector<64x32xf32>
    %48 = arith.addf %45, %47 : vector<64x32xf32>
    %c0_33 = arith.constant 0 : index
    %c0_34 = arith.constant 0 : index
    %49 = vector.load %arg11[%c0_33, %c0_34] : memref<64x32xf32, #tpu.memory_space<vmem>>, vector<64x32xf32>
    tpu.vector_store %arg11[%c0_33, %c0_34], %48 {strides = array<i32>} : memref<64x32xf32, #tpu.memory_space<vmem>>, vector<64x32xf32>,
    return
  }
  func.func @transform_0(%arg0: i32) -> (i32, i32) {
    %c0_i32 = arith.constant 0 : i32
    %c0_i32_0 = arith.constant 0 : i32
    return %arg0, %c0_i32 : i32, i32
  }
  func.func @transform_1(%arg0: i32) -> (i32, i32) {
    %c0_i32 = arith.constant 0 : i32
    %c0_i32_0 = arith.constant 0 : i32
    %c0_i32_1 = arith.constant 0 : i32
    return %c0_i32, %c0_i32_0 : i32, i32
  }
  func.func @transform_2(%arg0: i32) -> (i32, i32) {
    %c0_i32 = arith.constant 0 : i32
    %c0_i32_0 = arith.constant 0 : i32
    %c0_i32_1 = arith.constant 0 : i32
    return %c0_i32, %c0_i32_0 : i32, i32
  }
  func.func @transform_3(%arg0: i32) -> (i32, i32) {
    %c0_i32 = arith.constant 0 : i32
    %c0_i32_0 = arith.constant 0 : i32
    %c0_i32_1 = arith.constant 0 : i32
    return %c0_i32, %c0_i32_0 : i32, i32
  }
  func.func @transform_4(%arg0: i32) -> (i32, i32) {
    %c0_i32 = arith.constant 0 : i32
    %c0_i32_0 = arith.constant 0 : i32
    %c0_i32_1 = arith.constant 0 : i32
    return %c0_i32, %c0_i32_0 : i32, i32
  }
  func.func @transform_5(%arg0: i32) -> (i32, i32) {
    %c0_i32 = arith.constant 0 : i32
    %c0_i32_0 = arith.constant 0 : i32
    %c0_i32_1 = arith.constant 0 : i32
    return %c0_i32, %c0_i32_0 : i32, i32
  }
  func.func @transform_6(%arg0: i32) -> (i32, i32) {
    %c0_i32 = arith.constant 0 : i32
    %c0_i32_0 = arith.constant 0 : i32
    %c0_i32_1 = arith.constant 0 : i32
    return %c0_i32, %c0_i32_0 : i32, i32
  }
  func.func @transform_7(%arg0: i32) -> (i32, i32) {
    %c0_i32 = arith.constant 0 : i32
    %c0_i32_0 = arith.constant 0 : i32
    %c0_i32_1 = arith.constant 0 : i32
    return %c0_i32, %c0_i32_0 : i32, i32
  }
  func.func @transform_8(%arg0: i32) -> (i32, i32) {
    %c0_i32 = arith.constant 0 : i32
    %c0_i32_0 = arith.constant 0 : i32
    %c0_i32_1 = arith.constant 0 : i32
    return %c0_i32, %c0_i32_0 : i32, i32
  }
  func.func @transform_9(%arg0: i32) -> (i32, i32) {
    %c0_i32 = arith.constant 0 : i32
    %c0_i32_0 = arith.constant 0 : i32
    return %arg0, %c0_i32 : i32, i32
  }
  func.func @transform_10(%arg0: i32) -> (i32, i32) {
    %c0_i32 = arith.constant 0 : i32
    %c0_i32_0 = arith.constant 0 : i32
    return %arg0, %c0_i32 : i32, i32
  }
}

</mosaic_0001>

<bundles_post_ra>
// kernel: ae_forward.1
= control target key start
LH: loop header
LB: loop body
LE: loop exit
PB: predicated region body
PF: predicated region fallthrough
CT: control target
= control target key end

     0   :  { %vm50_vm0 = vcmask 261120   ;;  %vm134_vm1 = vcmask 203776   ;;  %vm229_vm2 = vcmask 7168   ;;  %vm238_vm3 = vcmask 15368   ;;  %s810_s1 = inlined_call_operand.vmem [shape: f32[32,25], index: 1, kind: input, shape index: {}]   ;;  %s811_s0 = inlined_call_operand.vmem [shape: f32[64,32], index: 0, kind: input, shape index: {}]   ;;  %s812_s2 = inlined_call_operand.vmem [shape: f32[1,25], index: 2, kind: input, shape index: {}]   ;;  %s813_s3 = inlined_call_operand.vmem [shape: f32[2,25], index: 3, kind: input, shape index: {}]   ;;  %s814_s4 = inlined_call_operand.vmem [shape: f32[1,2], index: 4, kind: input, shape index: {}]   ;;  %s815_s5 = inlined_call_operand.vmem [shape: f32[2,25], index: 5, kind: input, shape index: {}]   ;;  %s816_s6 = inlined_call_operand.vmem [shape: f32[1,25], index: 6, kind: input, shape index: {}]   ;;  %s817_s9 = inlined_call_operand.vmem [shape: f32[64,2], index: 9, kind: output, shape index: {0}]   ;;  %s818_s8 = inlined_call_operand.vmem [shape: f32[1,32], index: 8, kind: input, shape index: {}]   ;;  %s819_s7 = inlined_call_operand.vmem [shape: f32[25,32], index: 7, kind: input, shape index: {}]   ;;  %s820_s10 = inlined_call_operand.vmem [shape: f32[64,32], index: 10, kind: output, shape index: {1}]  }
   0x1   :  { %v45_v0 = vld [vmem:[%s810_s1 + $0x18] sm:$0xff]  ;;  %v44_v1 = vld [vmem:[%s810_s1 + $0x10] sm:$0xff]  ;;  %v43_v2 = vld [vmem:[%s810_s1 + $0x8] sm:$0xff]  ;;  %vm407_vm4 = vcmask 1040384  }
   0x2   :  { %87 = vmatpush.msra.mxu0 %v45_v0  ;;  %485 = vmatpush.msra.mxu2 %v45_v0  ;;  %v42_v3 = vld [vmem:[%s810_s1] sm:$0xff]  ;;  %v39_v6 = vld [vmem:[%s811_s0 + $0x28] sm:$0xff]  ;;  %v36_v8 = vld [vmem:[%s811_s0 + $0x10] sm:$0xff] }
   0x3   :  { %v34_v4 = vld [vmem:[%s811_s0] sm:$0xff]  ;;  %v35_v7 = vld [vmem:[%s811_s0 + $0x8] sm:$0xff]  ;;  %v40_v9 = vld [vmem:[%s811_s0 + $0x30] sm:$0xff] }
   0x4   :  { %88 = vmatpush.msra.mxu0 %v44_v1  ;;  %486 = vmatpush.msra.mxu2 %v44_v1  ;;  %v38_v5 = vld [vmem:[%s811_s0 + $0x20] sm:$0xff]  ;;  %v37_v10 = vld [vmem:[%s811_s0 + $0x18] sm:$0xff] }
   0x5   :  { %v41_v11 = vld [vmem:[%s811_s0 + $0x38] sm:$0xff]  ;;  %v506_v12 = vld [vmem:[%s812_s2] ss:$0 sm:$0xff]  ;;  %v508_v21 = vld [vmem:[%s813_s3 + $0x1] ss:$0 sm:$0xff] }
   0x6   :  { %89 = vmatpush.msra.mxu0 %v43_v2  ;;  %487 = vmatpush.msra.mxu2 %v43_v2  ;;  %v621_v15 = vld [vmem:[%s813_s3] ss:$0 sm:$0xff] }
   0x8   :  { %90 = vmatpush.msra.mxu0 %v42_v3  ;;  %488 = vmatpush.msra.mxu2 %v42_v3 }
   0x9   :  { %468 = vmatmul.msk.f32.vlgmr.msra.gmra.mxu0 %vm50_vm0, %v34_v4  ;;  %472 = vmatmul.msk.f32.vlgmr.msra.gmra.mxu2 %vm50_vm0, %v38_v5 }
  0x11   :  { %473 = vmatmul.msk.f32.gmra.mxu2 %vm50_vm0, %v39_v6  ;;  %469 = vmatmul.msk.f32.gmra.mxu0 %vm50_vm0, %v35_v7  ;;  %v514_v7 = vmov 0  }
  0x12   :  { %495 = vset.pattern.permute.xlu0 %v514_v7  ;;  %497 = vset.pattern.permute.xlu1 %v514_v7 }
  0x19   :  { %470 = vmatmul.msk.f32.gmra.mxu0 %vm50_vm0, %v36_v8  ;;  %474 = vmatmul.msk.f32.gmra.mxu2 %vm50_vm0, %v40_v9  ;;  %v515_v8 = vmov 1   ;;  %v656_v9 = vld [vmem:[%s814_s4] ss:$0 sm:$0xff] }
  0x1a   :  { %496 = vset.pattern.permute.xlu2 %v515_v8 }
  0x21   :  { %471 = vmatmul.msk.f32.gmra.mxu0 %vm50_vm0, %v37_v10  ;;  %475 = vmatmul.msk.f32.gmra.mxu2 %vm50_vm0, %v41_v11 }
  0x86   :  { %v92_v13 = vpop.f32.mrf.mxu0 }
  0x87   :  { %v93_v14 = vadd.f32 %v506_v12, %v92_v13 }
  0x89   :  { %v116_v16 = vmax.f32 %v93_v14, 0.0 }
  0x8b   :  { %v126_v17 = vmul.f32 %v621_v15, %v116_v16  ;;  %v173_v24 = vmul.f32 %v508_v21, %v116_v16 }
  0x8c   :  { %v104_v18 = vpop.f32.mrf.mxu2 }
  0x8d   :  { %v105_v19 = vadd.f32 %v506_v12, %v104_v18  ;;  %v135_v20 = vsel %vm134_vm1, %v126_v17, 0.0  ;;  %v181_v28 = vsel %vm134_vm1, %v173_v24, 0.0 }
  0x8e   :  { %136 = vadd.xlane.f32.xlu1 %v135_v20  ;;  %v95_v22 = vpop.f32.mrf.mxu0 }
  0x8f   :  { %v120_v23 = vmax.f32 %v105_v19, 0.0  ;;  %v96_v25 = vadd.f32 %v506_v12, %v95_v22 }
  0x91   :  { %v130_v26 = vmul.f32 %v621_v15, %v120_v23  ;;  %v117_v29 = vmax.f32 %v96_v25, 0.0  ;;  %v177_v34 = vmul.f32 %v508_v21, %v120_v23 }
  0x93   :  { %v147_v27 = vsel %vm134_vm1, %v130_v26, 0.0  ;;  %v174_v35 = vmul.f32 %v508_v21, %v117_v29  ;;  %v193_v39 = vsel %vm134_vm1, %v177_v34, 0.0  ;;  %v127_v44 = vmul.f32 %v621_v15, %v117_v29 }
  0x94   :  { %v107_v30 = vpop.f32.mrf.mxu2  ;;  %148 = vadd.xlane.f32.xlu0 %v147_v27 }
  0x95   :  { %v108_v31 = vadd.f32 %v506_v12, %v107_v30  ;;  %v184_v40 = vsel %vm134_vm1, %v174_v35, 0.0  ;;  %v138_v48 = vsel %vm134_vm1, %v127_v44, 0.0 }
  0x96   :  { %182 = vadd.xlane.f32.xlu1 %v181_v28  ;;  %v98_v32 = vpop.f32.mrf.mxu0 }
  0x97   :  { %v121_v33 = vmax.f32 %v108_v31, 0.0  ;;  %v99_v37 = vadd.f32 %v506_v12, %v98_v32 }
  0x99   :  { %v131_v36 = vmul.f32 %v621_v15, %v121_v33  ;;  %v178_v42 = vmul.f32 %v508_v21, %v121_v33  ;;  %v118_v43 = vmax.f32 %v99_v37, 0.0 }
  0x9b   :  { %v150_v38 = vsel %vm134_vm1, %v131_v36, 0.0  ;;  %v128_v46 = vmul.f32 %v621_v15, %v118_v43  ;;  %v196_v47 = vsel %vm134_vm1, %v178_v42, 0.0  ;;  %v175_v53 = vmul.f32 %v508_v21, %v118_v43 }
  0x9c   :  { %151 = vadd.xlane.f32.xlu2 %v150_v38  ;;  %194 = vadd.xlane.f32.xlu0 %v193_v39  ;;  %v110_v41 = vpop.f32.mrf.mxu2 }
  0x9d   :  { %v111_v45 = vadd.f32 %v506_v12, %v110_v41  ;;  %v141_v51 = vsel %vm134_vm1, %v128_v46, 0.0  ;;  %v187_v58 = vsel %vm134_vm1, %v175_v53, 0.0 }
  0x9e   :  { %185 = vadd.xlane.f32.xlu1 %v184_v40  ;;  %v101_v50 = vpop.f32.mrf.mxu0 }
  0x9f   :  { %v122_v49 = vmax.f32 %v111_v45, 0.0  ;;  %v102_v55 = vadd.f32 %v506_v12, %v101_v50 }
  0xa1   :  { %v179_v54 = vmul.f32 %v508_v21, %v122_v49  ;;  %v119_v60 = vmax.f32 %v102_v55, 0.0  ;;  %v132_v63 = vmul.f32 %v621_v15, %v122_v49 }
  0xa3   :  { %v199_v59 = vsel %vm134_vm1, %v179_v54, 0.0  ;;  %v176_v0 = vmul.f32 %v508_v21, %v119_v60  ;;  %v153_v1 = vsel %vm134_vm1, %v132_v63, 0.0  ;;  %v129_v3 = vmul.f32 %v621_v15, %v119_v60  ;;  %v376_v60 = vld [vmem:[%s819_s7 + $0x8] sm:$0xff] }
  0xa4   :  { %197 = vadd.xlane.f32.xlu2 %v196_v47  ;;  %139 = vadd.xlane.f32.xlu0 %v138_v48  ;;  %v113_v52 = vpop.f32.mrf.mxu2 }
  0xa5   :  { %v114_v56 = vadd.f32 %v506_v12, %v113_v52  ;;  %v190_v2 = vsel %vm134_vm1, %v176_v0, 0.0  ;;  %v144_v5 = vsel %vm134_vm1, %v129_v3, 0.0  ;;  %v510_v0 = vld [vmem:[%s815_s5 + $0x1] ss:$0 sm:$0xff] }
  0xa6   :  { %142 = vadd.xlane.f32.xlu1 %v141_v51 }
  0xa7   :  { %v123_v57 = vmax.f32 %v114_v56, 0.0 }
  0xa9   :  { %v180_v61 = vmul.f32 %v508_v21, %v123_v57  ;;  %v133_v4 = vmul.f32 %v621_v15, %v123_v57 }
  0xab   :  { %v202_v62 = vsel %vm134_vm1, %v180_v61, 0.0  ;;  %v156_v6 = vsel %vm134_vm1, %v133_v4, 0.0  ;;  %v375_v61 = vld [vmem:[%s819_s7] sm:$0xff] }
  0xac   :  { %188 = vadd.xlane.f32.xlu2 %v187_v58  ;;  %200 = vadd.xlane.f32.xlu0 %v199_v59  ;;  %v378_v58 = vld [vmem:[%s819_s7 + $0x18] sm:$0x1]  ;;  %v377_v59 = vld [vmem:[%s819_s7 + $0x10] sm:$0xff] }
  0xad   :  { %476 = vmatpush.msk.msra.mxu1 %vm407_vm4, %v378_v58  ;;  %489 = vmatpush.msk.msra.mxu3 %vm407_vm4, %v378_v58 }
  0xae   :  { %203 = vadd.xlane.f32.xlu1 %v202_v62 }
  0xaf   :  { %424 = vmatpush.msra.mxu1 %v377_v59  ;;  %490 = vmatpush.msra.mxu3 %v377_v59 }
  0xb1   :  { %425 = vmatpush.msra.mxu1 %v376_v60  ;;  %491 = vmatpush.msra.mxu3 %v376_v60 }
  0xb3   :  { %426 = vmatpush.msra.mxu1 %v375_v61  ;;  %492 = vmatpush.msra.mxu3 %v375_v61 }
  0xb4   :  { %154 = vadd.xlane.f32.xlu2 %v153_v1  ;;  %191 = vadd.xlane.f32.xlu0 %v190_v2  ;;  %v511_v1 = vld [vmem:[%s815_s5] ss:$0 sm:$0xff] }
  0xbc   :  { %145 = vadd.xlane.f32.xlu2 %v144_v5  ;;  %157 = vadd.xlane.f32.xlu0 %v156_v6  ;;  %v512_v5 = vld [vmem:[%s816_s6] ss:$0 sm:$0xff] }
 0x101   :  { %v137_v10 = vpop.xlane.xlu1 %136 }
 0x102   :  { %v163_v11 = vadd.f32 %v656_v9, %v137_v10 }
 0x104   :  { %v213_v12 = vmax.f32 %v163_v11, 0.0 }
 0x106   :  { %230 = vst.msk [vmem:[%s817_s9] sm:$0xff] %vm229_vm2, %v213_v12  ;;  %250 = vperm.xlu0 %495, %v213_v12  }
 0x107   :  { %v149_v13 = vpop.xlane.xlu0 %148 }
 0x108   :  { %v167_v14 = vadd.f32 %v656_v9, %v149_v13 }
 0x109   :  { %v183_v15 = vpop.xlane.xlu1 %182 }
 0x10a   :  { %v217_v16 = vmax.f32 %v167_v14, 0.0  ;;  %v205_v17 = vadd.f32 %v656_v9, %v183_v15 }
 0x10c   :  { %234 = vst.msk [vmem:[%s817_s9 + $0x20] sm:$0xff] %vm229_vm2, %v217_v16  ;;  %v221_v18 = vmax.f32 %v205_v17, 0.0  ;;  %270 = vperm.xlu1 %497, %v217_v16  }
 0x10e   :  { %239 = vst.msk [vmem:[%s817_s9] sm:$0xff] %vm238_vm3, %v221_v18  ;;  %300 = vperm.xlu2 %496, %v221_v18   ;;  %501 = vset.pattern.permute.xlu0 %v515_v8 }
 0x10f   :  { %v152_v19 = vpop.xlane.xlu2 %151  ;;  %v195_v20 = vpop.xlane.xlu0 %194 }
 0x110   :  { %v168_v21 = vadd.f32 %v656_v9, %v152_v19  ;;  %v209_v22 = vadd.f32 %v656_v9, %v195_v20 }
 0x111   :  { %v186_v23 = vpop.xlane.xlu1 %185 }
 0x112   :  { %v218_v24 = vmax.f32 %v168_v21, 0.0  ;;  %v225_v25 = vmax.f32 %v209_v22, 0.0  ;;  %v206_v26 = vadd.f32 %v656_v9, %v186_v23 }
 0x114   :  { %235 = vst.msk [vmem:[%s817_s9 + $0x28] sm:$0xff] %vm229_vm2, %v218_v24  ;;  %v222_v34 = vmax.f32 %v206_v26, 0.0 }
 0x115   :  { %243 = vst.msk [vmem:[%s817_s9 + $0x20] sm:$0xff] %vm238_vm3, %v225_v25 }
 0x116   :  { %320 = vperm.xlu2 %496, %v225_v25  }
 0x117   :  { %v198_v27 = vpop.xlane.xlu2 %197  ;;  %v140_v28 = vpop.xlane.xlu0 %139 }
 0x118   :  { %v210_v29 = vadd.f32 %v656_v9, %v198_v27  ;;  %v164_v30 = vadd.f32 %v656_v9, %v140_v28 }
 0x119   :  { %v143_v31 = vpop.xlane.xlu1 %142 }
 0x11a   :  { %v226_v32 = vmax.f32 %v210_v29, 0.0  ;;  %v214_v33 = vmax.f32 %v164_v30, 0.0  ;;  %v165_v35 = vadd.f32 %v656_v9, %v143_v31 }
 0x11c   :  { %244 = vst.msk [vmem:[%s817_s9 + $0x28] sm:$0xff] %vm238_vm3, %v226_v32  ;;  %255 = vperm.xlu1 %497, %v214_v33   ;;  %v215_v36 = vmax.f32 %v165_v35, 0.0 }
 0x11d   :  { %231 = vst.msk [vmem:[%s817_s9 + $0x8] sm:$0xff] %vm229_vm2, %v214_v33 }
 0x11e   :  { %240 = vst.msk [vmem:[%s817_s9 + $0x8] sm:$0xff] %vm238_vm3, %v222_v34  ;;  %305 = vperm.xlu2 %496, %v222_v34  }
 0x11f   :  { %v189_v37 = vpop.xlane.xlu2 %188  ;;  %v201_v38 = vpop.xlane.xlu0 %200  ;;  %232 = vst.msk [vmem:[%s817_s9 + $0x10] sm:$0xff] %vm229_vm2, %v215_v36 }
 0x120   :  { %v207_v39 = vadd.f32 %v656_v9, %v189_v37  ;;  %v211_v40 = vadd.f32 %v656_v9, %v201_v38 }
 0x121   :  { %v204_v47 = vpop.xlane.xlu1 %203 }
 0x122   :  { %v223_v41 = vmax.f32 %v207_v39, 0.0  ;;  %v227_v42 = vmax.f32 %v211_v40, 0.0  ;;  %v212_v51 = vadd.f32 %v656_v9, %v204_v47 }
 0x124   :  { %275 = vperm.xlu1 %497, %v218_v24   ;;  %241 = vst.msk [vmem:[%s817_s9 + $0x10] sm:$0xff] %vm238_vm3, %v223_v41  ;;  %330 = vperm.xlu0 %501, %v227_v42   ;;  %v228_v57 = vmax.f32 %v212_v51, 0.0 }
 0x126   :  { %325 = vperm.xlu2 %496, %v226_v32  }
 0x127   :  { %v155_v43 = vpop.xlane.xlu2 %154  ;;  %v192_v44 = vpop.xlane.xlu0 %191 }
 0x128   :  { %v169_v45 = vadd.f32 %v656_v9, %v155_v43  ;;  %v208_v48 = vadd.f32 %v656_v9, %v192_v44 }
 0x12a   :  { %v219_v46 = vmax.f32 %v169_v45, 0.0  ;;  %v224_v54 = vmax.f32 %v208_v48, 0.0 }
 0x12c   :  { %236 = vst.msk [vmem:[%s817_s9 + $0x30] sm:$0xff] %vm229_vm2, %v219_v46  ;;  %499 = vset.pattern.permute.xlu1 %v515_v8  ;;  %503 = vset.pattern.permute.xlu0 %v514_v7 }
 0x12d   :  { %245 = vst.msk [vmem:[%s817_s9 + $0x30] sm:$0xff] %vm238_vm3, %v227_v42  ;;  %310 = vperm.xlu1 %499, %v223_v41  }
 0x12e   :  { %498 = vset.pattern.permute.xlu2 %v514_v7 }
 0x12f   :  { %v146_v49 = vpop.xlane.xlu2 %145  ;;  %260 = vperm.xlu2 %498, %v215_v36   ;;  %v158_v50 = vpop.xlane.xlu0 %157 }
 0x130   :  { %v166_v52 = vadd.f32 %v656_v9, %v146_v49  ;;  %v170_v53 = vadd.f32 %v656_v9, %v158_v50 }
 0x132   :  { %v216_v55 = vmax.f32 %v166_v52, 0.0  ;;  %v220_v56 = vmax.f32 %v170_v53, 0.0 }
 0x134   :  { %233 = vst.msk [vmem:[%s817_s9 + $0x18] sm:$0xff] %vm229_vm2, %v216_v55  ;;  %265 = vperm.xlu0 %503, %v216_v55  }
 0x135   :  { %242 = vst.msk [vmem:[%s817_s9 + $0x18] sm:$0xff] %vm238_vm3, %v224_v54  ;;  %500 = vset.pattern.permute.xlu1 %v514_v7 }
 0x136   :  { %280 = vperm.xlu1 %500, %v219_v46   ;;  %237 = vst.msk [vmem:[%s817_s9 + $0x38] sm:$0xff] %vm229_vm2, %v220_v56 }
 0x137   :  { %246 = vst.msk [vmem:[%s817_s9 + $0x38] sm:$0xff] %vm238_vm3, %v228_v57  ;;  %285 = vperm.xlu2 %498, %v220_v56  }
 0x13c   :  { %505 = vset.pattern.permute.xlu0 %v515_v8 }
 0x13e   :  { %502 = vset.pattern.permute.xlu1 %v515_v8 }
 0x13f   :  { %335 = vperm.xlu1 %502, %v228_v57   ;;  %504 = vset.pattern.permute.xlu2 %v515_v8  ;;  %v513_v57 = vld [vmem:[%s818_s8] ss:$0 sm:$0xff] }
 0x140   :  { %315 = vperm.xlu2 %504, %v224_v54  }
 0x168   :  { %v301_v62 = vpop.permute.xlu2 %300 }
 0x169   :  { %v339_v3 = vmul.f32 %v510_v0, %v301_v62 }
 0x170   :  { %v321_v63 = vpop.permute.xlu2 %320 }
 0x171   :  { %v343_v10 = vmul.f32 %v510_v0, %v321_v63 }
 0x178   :  { %v251_v2 = vpop.permute.xlu0 %250  ;;  %v306_v8 = vpop.permute.xlu2 %305 }
 0x179   :  { %v289_v4 = vmul.f32 %v511_v1, %v251_v2  ;;  %v340_v18 = vmul.f32 %v510_v0, %v306_v8 }
 0x17b   :  { %v347_v6 = vadd.f32 %v339_v3, %v289_v4 }
 0x17d   :  { %v359_v7 = vadd.f32 %v512_v5, %v347_v6 }
 0x17e   :  { %v271_v9 = vpop.permute.xlu1 %270 }
 0x17f   :  { %v293_v11 = vmul.f32 %v511_v1, %v271_v9  ;;  %v367_v12 = vmax.f32 %v359_v7, 0.0 }
 0x180   :  { %v326_v16 = vpop.permute.xlu2 %325 }
 0x181   :  { %v351_v13 = vadd.f32 %v343_v10, %v293_v11  ;;  %477 = vmatmul.msk.f32.vlgmr.msra.gmra.mxu1 %vm134_vm1, %v367_v12  ;;  %v344_v25 = vmul.f32 %v510_v0, %v326_v16 }
 0x183   :  { %v363_v14 = vadd.f32 %v512_v5, %v351_v13 }
 0x185   :  { %v371_v15 = vmax.f32 %v363_v14, 0.0 }
 0x187   :  { %481 = vmatmul.msk.f32.vlgmr.msra.gmra.mxu3 %vm134_vm1, %v371_v15 }
 0x189   :  { %v261_v21 = vpop.permute.xlu2 %260 }
 0x18a   :  { %v291_v33 = vmul.f32 %v511_v1, %v261_v21 }
 0x18e   :  { %v256_v17 = vpop.permute.xlu1 %255 }
 0x18f   :  { %v290_v19 = vmul.f32 %v511_v1, %v256_v17 }
 0x191   :  { %v348_v20 = vadd.f32 %v340_v18, %v290_v19  ;;  %v286_v28 = vpop.permute.xlu2 %285 }
 0x192   :  { %v296_v52 = vmul.f32 %v511_v1, %v286_v28 }
 0x193   :  { %v360_v22 = vadd.f32 %v512_v5, %v348_v20 }
 0x195   :  { %v368_v23 = vmax.f32 %v360_v22, 0.0 }
 0x196   :  { %v276_v24 = vpop.permute.xlu1 %275  ;;  %v331_v30 = vpop.permute.xlu0 %330 }
 0x197   :  { %v294_v26 = vmul.f32 %v511_v1, %v276_v24  ;;  %478 = vmatmul.msk.f32.gmra.mxu1 %vm134_vm1, %v368_v23  ;;  %v345_v40 = vmul.f32 %v510_v0, %v331_v30 }
 0x199   :  { %v352_v27 = vadd.f32 %v344_v25, %v294_v26 }
 0x19a   :  { %v316_v36 = vpop.permute.xlu2 %315 }
 0x19b   :  { %v364_v29 = vadd.f32 %v512_v5, %v352_v27  ;;  %v342_v41 = vmul.f32 %v510_v0, %v316_v36 }
 0x19d   :  { %v372_v31 = vmax.f32 %v364_v29, 0.0 }
 0x19f   :  { %482 = vmatmul.msk.f32.gmra.mxu3 %vm134_vm1, %v372_v31  ;;  %v311_v32 = vpop.permute.xlu1 %310 }
 0x1a0   :  { %v341_v34 = vmul.f32 %v510_v0, %v311_v32 }
 0x1a2   :  { %v349_v35 = vadd.f32 %v341_v34, %v291_v33 }
 0x1a4   :  { %v361_v37 = vadd.f32 %v512_v5, %v349_v35 }
 0x1a6   :  { %v266_v38 = vpop.permute.xlu0 %265  ;;  %v369_v39 = vmax.f32 %v361_v37, 0.0 }
 0x1a7   :  { %v292_v42 = vmul.f32 %v511_v1, %v266_v38 }
 0x1a8   :  { %479 = vmatmul.msk.f32.gmra.mxu1 %vm134_vm1, %v369_v39  ;;  %v281_v43 = vpop.permute.xlu1 %280 }
 0x1a9   :  { %v350_v44 = vadd.f32 %v342_v41, %v292_v42  ;;  %v295_v45 = vmul.f32 %v511_v1, %v281_v43 }
 0x1ab   :  { %v353_v46 = vadd.f32 %v345_v40, %v295_v45  ;;  %v362_v47 = vadd.f32 %v512_v5, %v350_v44 }
 0x1ad   :  { %v370_v48 = vmax.f32 %v362_v47, 0.0  ;;  %v365_v49 = vadd.f32 %v512_v5, %v353_v46 }
 0x1af   :  { %v373_v50 = vmax.f32 %v365_v49, 0.0 }
 0x1b0   :  { %480 = vmatmul.msk.f32.gmra.mxu1 %vm134_vm1, %v370_v48 }
 0x1b1   :  { %483 = vmatmul.msk.f32.gmra.mxu3 %vm134_vm1, %v373_v50  ;;  %v336_v51 = vpop.permute.xlu1 %335 }
 0x1b2   :  { %v346_v53 = vmul.f32 %v510_v0, %v336_v51 }
 0x1b4   :  { %v354_v54 = vadd.f32 %v346_v53, %v296_v52 }
 0x1b6   :  { %v366_v55 = vadd.f32 %v512_v5, %v354_v54 }
 0x1b8   :  { %v374_v56 = vmax.f32 %v366_v55, 0.0 }
 0x1ba   :  { %484 = vmatmul.msk.f32.gmra.mxu3 %vm134_vm1, %v374_v56 }
 0x1fe   :  { %v428_v58 = vpop.f32.mrf.mxu1 }
 0x1ff   :  { %v429_v59 = vadd.f32 %v513_v57, %v428_v58 }
 0x201   :  { %452 = vst.msk [vmem:[%s820_s10] sm:$0xff] %vm50_vm0, %v429_v59 }
 0x20a   :  { %v440_v60 = vpop.f32.mrf.mxu3 }
 0x20b   :  { %v441_v61 = vadd.f32 %v513_v57, %v440_v60 }
 0x20d   :  { %456 = vst.msk [vmem:[%s820_s10 + $0x20] sm:$0xff] %vm50_vm0, %v441_v61 }
 0x214   :  { %v431_v62 = vpop.f32.mrf.mxu1 }
 0x215   :  { %v432_v63 = vadd.f32 %v513_v57, %v431_v62 }
 0x217   :  { %453 = vst.msk [vmem:[%s820_s10 + $0x8] sm:$0xff] %vm50_vm0, %v432_v63 }
 0x222   :  { %v443_v0 = vpop.f32.mrf.mxu3 }
 0x223   :  { %v444_v1 = vadd.f32 %v513_v57, %v443_v0 }
 0x225   :  { %457 = vst.msk [vmem:[%s820_s10 + $0x28] sm:$0xff] %vm50_vm0, %v444_v1  ;;  %v434_v2 = vpop.f32.mrf.mxu1 }
 0x226   :  { %v435_v3 = vadd.f32 %v513_v57, %v434_v2 }
 0x228   :  { %454 = vst.msk [vmem:[%s820_s10 + $0x10] sm:$0xff] %vm50_vm0, %v435_v3 }
 0x22d   :  { %v437_v4 = vpop.f32.mrf.mxu1 }
 0x22e   :  { %v438_v5 = vadd.f32 %v513_v57, %v437_v4 }
 0x230   :  { %455 = vst.msk [vmem:[%s820_s10 + $0x18] sm:$0xff] %vm50_vm0, %v438_v5 }
 0x234   :  { %v446_v6 = vpop.f32.mrf.mxu3 }
 0x235   :  { %v447_v7 = vadd.f32 %v513_v57, %v446_v6 }
 0x237   :  { %458 = vst.msk [vmem:[%s820_s10 + $0x30] sm:$0xff] %vm50_vm0, %v447_v7 }
 0x23d   :  { %v449_v8 = vpop.f32.mrf.mxu3 }
 0x23e   :  { %v450_v9 = vadd.f32 %v513_v57, %v449_v8 }
 0x240   :  { %459 = vst.msk [vmem:[%s820_s10 + $0x38] sm:$0xff] %vm50_vm0, %v450_v9 }

</bundles_post_ra>
